<compile_context>
chip_gen: v6e
topology: v6e:2x2x1
jax: 0.10.0
libtpu: 0.0.40
codegen_flags: <defaults>
</compile_context>

<pallas_src>
import functools

import jax
import jax.numpy as jnp
from jax import lax
from jax.experimental import pallas as pl
from jax.experimental.pallas import tpu as pltpu


# ---------------------------------------------------------------------------
# Generation-aware sizing
# ---------------------------------------------------------------------------

def _tpu_vmem_capacity_bytes():
    try:
        return int(pltpu.get_tpu_info().vmem_capacity_bytes)
    except Exception:
        # Conservative fallback (safe on every generation, incl. v7x's 64 MiB).
        return 64 * 1024 * 1024


def _budget(n_streams, itemsize):
    """(target block bytes, vmem_limit_bytes) from the chip's VMEM size."""
    vmem_cap = _tpu_vmem_capacity_bytes()
    # streams x 2 buffers x block + fp32 accumulator headroom <= ~VMEM/2.
    usable = min(vmem_cap // 2, 64 * 1024 * 1024)
    acc_factor = max(1, (2 * 4) // max(1, itemsize))   # fp32 acc intermediate
    denom = 2 * n_streams + acc_factor
    target = usable // max(1, denom)
    target = max(1 << 20, min(4 << 20, target))        # 1-4 MiB blocks
    vmem_limit = min(vmem_cap * 3 // 4, 96 * 1024 * 1024)
    return target, vmem_limit


# ---------------------------------------------------------------------------
# Tile choosers
# ---------------------------------------------------------------------------

def _flat_lane_tile(total, cands=(2048, 1024, 512, 256, 128)):
    """Largest multiple-of-128 lane width dividing the flattened size."""
    for cand in cands:
        if total % cand == 0:
            return cand
    return None


def _choose_lane_tile(hw, max_lanes=2048):
    """Largest multiple-of-128 tile dividing hw (or the full dim)."""
    if hw <= max_lanes:
        return hw
    for cand in range(max_lanes - max_lanes % 128, 127, -128):
        if hw % cand == 0:
            return cand
    return hw  # no multiple-of-128 divisor -> full dim (still legal block)


def _choose_channel_tile(nc, lane_tile, itemsize, target_bytes):
    """Channel tile: multiple of 8 dividing nc, block bytes ~<= target."""
    if nc % 8 != 0:
        return nc  # tiny / odd channel count: full-dim block
    cap = max(8, (target_bytes // max(1, lane_tile * itemsize)) // 8 * 8)
    tc = 8
    for cand in range(8, nc + 1, 8):
        if nc % cand == 0 and cand <= cap:
            tc = cand
    return tc


# ---------------------------------------------------------------------------
# Index maps (general path): grid = (batch, spatial_blk, channel_blk)
# ---------------------------------------------------------------------------

def _io_index(b, s, c):
    return (b, c, s)


def _clamped_index(last_blk, b, s, c):
    # dc>0 skip: clamp the channel-block index; channels >= ac are masked to
    # zero inside the kernel.  Channel axis is the innermost grid dim, so the
    # clamped (repeated) block index lets Pallas elide the re-DMA.
    return (b, jnp.minimum(c, last_blk), s)


# ---------------------------------------------------------------------------
# Kernel
# ---------------------------------------------------------------------------

def _make_fusion_kernel(n_skips, weighted, mask_acs, tc, out_dtype):
    """Fused elementwise kernel, specialized on static per-branch info.

    mask_acs[i] is None if skip i needs no masking, otherwise the static true
    channel count `ac` (dc>0 handled zero-copy: channels >= ac are zeroed).
    """
    need_mask = any(ac is not None for ac in mask_acs)

    def kernel(*refs):
        if weighted:
            w_ref, refs = refs[0], refs[1:]
        x_ref = refs[0]
        a_refs = refs[1:1 + n_skips]
        o_ref = refs[-1]

        if weighted:
            # Hoist SMEM scalar reads: each weight read exactly once per step.
            w = [w_ref[i] for i in range(n_skips + 1)]
            acc = x_ref[...].astype(jnp.float32) * w[0]
        else:
            acc = x_ref[...].astype(jnp.float32)

        if need_mask:
            # Channel grid axis is innermost (axis 2).  Channel-only iota,
            # broadcast across lanes in the select (no block-sized temporary).
            c_blk = pl.program_id(2)
            ch = c_blk * tc + lax.broadcasted_iota(jnp.int32, (1, tc, 1), 1)

        for i in range(n_skips):
            a = a_refs[i][...].astype(jnp.float32)
            if weighted:
                a = a * w[i + 1]
            ac = mask_acs[i]
            if ac is not None:
                # Select AFTER the weight multiply so padded garbage can never
                # leak into the sum.
                a = jnp.where(ch < ac, a, 0.0)
            acc = acc + a

        o_ref[...] = acc.astype(out_dtype)

    return kernel


# ---------------------------------------------------------------------------
# Fast path: every skip has ac == nc -> lane-dense flattened 2-D view
# ---------------------------------------------------------------------------

def _fused_flat(x, skips, w, dtype, target_block_bytes, vmem_limit):
    total = int(x.size)
    itemsize = jnp.dtype(dtype).itemsize
    n_skips = len(skips)
    weighted = w is not None

    lane = _flat_lane_tile(total)
    rows = total // lane
    rows_target = max(8, (target_block_bytes // max(1, lane * itemsize)) // 8 * 8)
    tr = rows if rows <= rows_target else rows_target
    blk = (tr, lane)
    idx = lambda i: (i, 0)

    in_arrays, in_specs = [], []
    if weighted:
        in_arrays.append(w)
        in_specs.append(pl.BlockSpec(memory_space=pltpu.MemorySpace.SMEM))
    in_arrays.append(x.reshape(rows, lane))
    in_specs.append(pl.BlockSpec(blk, idx))
    x_arg_index = len(in_arrays) - 1
    for a in skips:
        in_arrays.append(a.reshape(rows, lane))
        in_specs.append(pl.BlockSpec(blk, idx))

    grid = (pl.cdiv(rows, tr),)
    kernel = _make_fusion_kernel(n_skips, weighted, (None,) * n_skips, 0, dtype)

    bytes_accessed = (sum(int(a.size) * jnp.dtype(a.dtype).itemsize
                          for a in in_arrays) + total * itemsize)
    flops = total * (n_skips + (n_skips + 1 if weighted else 0))

    return pl.pallas_call(
        kernel,
        grid=grid,
        in_specs=in_specs,
        out_specs=pl.BlockSpec(blk, idx),
        out_shape=jax.ShapeDtypeStruct((rows, lane), dtype),
        input_output_aliases={x_arg_index: 0},
        cost_estimate=pl.CostEstimate(flops=flops, transcendentals=0,
                                      bytes_accessed=bytes_accessed),
        compiler_params=pltpu.CompilerParams(
            dimension_semantics=("parallel",),
            vmem_limit_bytes=vmem_limit,
        ),
    )(*in_arrays)


# ---------------------------------------------------------------------------
# Public wrapper
# ---------------------------------------------------------------------------

def weighted_feature_fusion(x, outputs, layers, w_param=None, *,
                            target_block_bytes=None,
                            channel_tile=None, lane_tile=None):
    """JAX/Pallas equivalent of weightedFeatureFusion.forward.

    x:        (N, C, H, W)
    outputs:  list of (N, Ci, H, W) arrays (negative `layers` indices OK)
    w_param:  None (weight=False) or 1-D array of length len(layers)+1
    """
    n = len(layers) + 1
    N, nc, H, W = x.shape
    hw = H * W
    total = N * nc * hw
    dtype = x.dtype
    itemsize = jnp.dtype(dtype).itemsize

    skips = [outputs[l] for l in layers]
    n_streams = (n - 1) + 2                       # x + skips + out
    auto_target, vmem_limit = _budget(n_streams, itemsize)
    tgt = target_block_bytes if target_block_bytes is not None else auto_target

    w = None
    if w_param is not None:
        w = jax.nn.sigmoid(w_param.astype(jnp.float32)) * (2.0 / n)

    # ---- Fast path: all shortcut branches channel-matched (common case) ----
    if (channel_tile is None and lane_tile is None
            and all(a.shape[1] == nc for a in skips)
            and _flat_lane_tile(total) is not None):
        out = _fused_flat(x, skips, w, dtype, tgt, vmem_limit)
        return out.reshape(N, nc, H, W)

    # ---- General path: channel mismatch / forced tiling -------------------
    tl = lane_tile if lane_tile is not None else _choose_lane_tile(hw)
    tc = (channel_tile if channel_tile is not None
          else _choose_channel_tile(nc, tl, itemsize, tgt))
    blk = (1, tc, tl)
    zero_copy_ok = (tc % 8 == 0)

    x3 = x.reshape(N, nc, hw)
    in_arrays, in_specs, mask_acs = [], [], []
    dma_bytes = 0

    if w is not None:
        in_arrays.append(w)
        in_specs.append(pl.BlockSpec(memory_space=pltpu.MemorySpace.SMEM))
        dma_bytes += int(w.size) * 4

    in_arrays.append(x3)
    in_specs.append(pl.BlockSpec(blk, _io_index))
    x_arg_index = len(in_arrays) - 1
    dma_bytes += total * itemsize

    for a in skips:
        ac = a.shape[1]
        a3 = a.reshape(N, ac, hw)
        a_itemsize = jnp.dtype(a.dtype).itemsize
        if ac == nc:
            in_arrays.append(a3)
            in_specs.append(pl.BlockSpec(blk, _io_index))
            mask_acs.append(None)
            dma_bytes += N * nc * hw * a_itemsize
        elif zero_copy_ok and ac > nc:
            # dc<0: truncation is free -- the grid only covers the first nc
            # channels, so only those are ever DMA'd.
            in_arrays.append(a3)
            in_specs.append(pl.BlockSpec(blk, _io_index))
            mask_acs.append(None)
            dma_bytes += N * nc * hw * a_itemsize
        elif zero_copy_ok:
            # dc>0: clamp channel-block index + in-kernel channel mask; the
            # innermost channel grid axis makes the clamped re-reads free.
            last_blk = pl.cdiv(ac, tc) - 1
            in_arrays.append(a3)
            in_specs.append(
                pl.BlockSpec(blk, functools.partial(_clamped_index, last_blk)))
            mask_acs.append(ac)
            dma_bytes += N * min(nc, (last_blk + 1) * tc) * hw * a_itemsize
        else:
            # Fallback for non-8-aligned channel tiles where the BlockSpec
            # cannot legally express the mismatch: align in the wrapper.
            if ac > nc:
                a3 = a3[:, :nc]
            else:
                a3 = jnp.pad(a3, ((0, 0), (0, nc - ac), (0, 0)))
            in_arrays.append(a3)
            in_specs.append(pl.BlockSpec(blk, _io_index))
            mask_acs.append(None)
            dma_bytes += N * nc * hw * a_itemsize

    dma_bytes += total * itemsize   # output writeback

    # Channel-tile axis innermost (see _clamped_index note above).
    grid = (N, pl.cdiv(hw, tl), pl.cdiv(nc, tc))

    kernel = _make_fusion_kernel(
        n_skips=n - 1, weighted=w is not None,
        mask_acs=tuple(mask_acs), tc=tc, out_dtype=dtype)

    flops = total * ((n - 1) + (n if w is not None else 0))

    fused = pl.pallas_call(
        kernel,
        grid=grid,
        in_specs=in_specs,
        out_specs=pl.BlockSpec(blk, _io_index),
        out_shape=jax.ShapeDtypeStruct((N, nc, hw), dtype),
        input_output_aliases={x_arg_index: 0},
        cost_estimate=pl.CostEstimate(flops=flops, transcendentals=0,
                                      bytes_accessed=dma_bytes),
        compiler_params=pltpu.CompilerParams(
            dimension_semantics=("parallel", "parallel", "parallel"),
            vmem_limit_bytes=vmem_limit,
        ),
    )(*in_arrays)

    return fused.reshape(N, nc, H, W)


# ---------------------------------------------------------------------------
# Self-test
# ---------------------------------------------------------------------------

if __name__ == "__main__":
    key = jax.random.PRNGKey(0)
    ks = jax.random.split(key, 12)

    def reference(x, outputs, layers, w_param=None):
        n = len(layers) + 1
        nc = x.shape[1]
        if w_param is not None:
            w = jax.nn.sigmoid(w_param.astype(jnp.float32)) * (2.0 / n)
            x = x * w[0]
        for i in range(n - 1):
            a = outputs[layers[i]]
            if w_param is not None:
                a = a * w[i + 1]
            ac = a.shape[1]
            dc = nc - ac
            if dc > 0:
                x = x.at[:, :ac].add(a)
            elif dc < 0:
                x = x + a[:, :nc]
            else:
                x = x + a
        return x

    # --- Case 1: small, non-8-aligned channels (wrapper-align fallback) ---
    N, C, H, W = 2, 4, 16, 16
    x = jax.random.normal(ks[0], (N, C, H, W), dtype=jnp.float32)
    out_small = jax.random.normal(ks[1], (N, 3, H, W), dtype=jnp.float32)  # dc>0
    out_big = jax.random.normal(ks[2], (N, 6, H, W), dtype=jnp.float32)    # dc<0
    outputs = [out_small, out_big]
    layers = [-2, -1]
    w_param = jnp.array([0.1, -0.2, 0.3], dtype=jnp.float32)

    y = jax.block_until_ready(
        weighted_feature_fusion(x, outputs, layers, w_param=w_param))
    assert jnp.allclose(y, reference(x, outputs, layers, w_param),
                        atol=1e-5, rtol=1e-5), "case1 weighted mismatch"

    y2 = jax.block_until_ready(
        weighted_feature_fusion(x, outputs, layers, w_param=None))
    assert jnp.allclose(y2, reference(x, outputs, layers, None),
                        atol=1e-5, rtol=1e-5), "case1 plain mismatch"

    # --- Case 2: 8-aligned channels -> zero-copy BlockSpec truncation (dc<0)
    #     and clamped-index + in-kernel-mask padding (dc>0); channel_tile=8
    #     forces multiple channel blocks so both no-copy paths are exercised
    #     (channel axis innermost in the grid).
    N, C, H, W = 2, 16, 16, 16
    xb = jax.random.normal(ks[3], (N, C, H, W), dtype=jnp.float32)
    o_eq = jax.random.normal(ks[4], (N, 16, H, W), dtype=jnp.float32)    # dc==0
    o_less = jax.random.normal(ks[5], (N, 12, H, W), dtype=jnp.float32)  # dc>0
    o_more = jax.random.normal(ks[6], (N, 24, H, W), dtype=jnp.float32)  # dc<0
    outputs_b = [o_eq, o_less, o_more]
    layers_b = [-3, -2, -1]
    w_param_b = jnp.array([0.05, -0.1, 0.2, -0.3], dtype=jnp.float32)

    yb = jax.block_until_ready(
        weighted_feature_fusion(xb, outputs_b, layers_b, w_param=w_param_b,
                                channel_tile=8))
    assert jnp.allclose(yb, reference(xb, outputs_b, layers_b, w_param_b),
                        atol=1e-5, rtol=1e-5), "case2 weighted mismatch"

    yb2 = jax.block_until_ready(
        weighted_feature_fusion(xb, outputs_b, layers_b, w_param=None,
                                channel_tile=8))
    assert jnp.allclose(yb2, reference(xb, outputs_b, layers_b, None),
                        atol=1e-5, rtol=1e-5), "case2 plain mismatch"

    # --- Case 3: all skips channel-matched -> lane-dense flattened fast path
    #     (small target_block_bytes forces a multi-step 1-D grid).
    N, C, H, W = 2, 32, 16, 16
    xc = jax.random.normal(ks[7], (N, C, H, W), dtype=jnp.float32)
    c_skip0 = jax.random.normal(ks[8], (N, C, H, W), dtype=jnp.float32)
    c_skip1 = jax.random.normal(ks[9], (N, C, H, W), dtype=jnp.float32)
    outputs_c = [c_skip0, c_skip1]
    layers_c = [-2, -1]
    w_param_c = jnp.array([0.2, -0.4, 0.1], dtype=jnp.float32)

    yc = jax.block_until_ready(
        weighted_feature_fusion(xc, outputs_c, layers_c, w_param=w_param_c,
                                target_block_bytes=16 * 1024))
    assert jnp.allclose(yc, reference(xc, outputs_c, layers_c, w_param_c),
                        atol=1e-5, rtol=1e-5), "case3 weighted mismatch"

    yc2 = jax.block_until_ready(
        weighted_feature_fusion(xc, outputs_c, layers_c, w_param=None))
    assert jnp.allclose(yc2, reference(xc, outputs_c, layers_c, None),
                        atol=1e-5, rtol=1e-5), "case3 plain mismatch"

    print("KERNEL_OK")
</pallas_src>

<mosaic_0001>
module attributes {stable_mosaic.version = 11 : i64} {
  func.func @kernel(%arg0: i32, %arg1: i32, %arg2: i32, %arg3: memref<3xf32, #tpu.memory_space<smem>>, %arg4: memref<1x4x256xf32, #tpu.memory_space<vmem>>, %arg5: memref<1x4x256xf32, #tpu.memory_space<vmem>>, %arg6: memref<1x4x256xf32, #tpu.memory_space<vmem>>, %arg7: memref<1x4x256xf32, #tpu.memory_space<vmem>>) attributes {dimension_semantics = [#tpu.dimension_semantics<parallel>, #tpu.dimension_semantics<parallel>, #tpu.dimension_semantics<parallel>], iteration_bounds = array<i64: 2, 1, 1>, scalar_prefetch = 0 : i64, scratch_operands = 0 : i64, tpu.core_type = #tpu.core_type<tc>, window_params = [{transform_indices = @transform_0, window_bounds = array<i64: 3>}, {transform_indices = @transform_1, window_bounds = array<i64: 1, 4, 256>}, {transform_indices = @transform_2, window_bounds = array<i64: 1, 4, 256>}, {transform_indices = @transform_3, window_bounds = array<i64: 1, 4, 256>}, {transform_indices = @transform_4, window_bounds = array<i64: 1, 4, 256>}]} {
    %c0 = arith.constant 0 : index
    %0 = memref.load %arg3[%c0] : memref<3xf32, #tpu.memory_space<smem>>
    %c1 = arith.constant 1 : index
    %1 = memref.load %arg3[%c1] : memref<3xf32, #tpu.memory_space<smem>>
    %c2 = arith.constant 2 : index
    %2 = memref.load %arg3[%c2] : memref<3xf32, #tpu.memory_space<smem>>
    %c0_0 = arith.constant 0 : index
    %c0_1 = arith.constant 0 : index
    %c0_2 = arith.constant 0 : index
    %3 = vector.load %arg4[%c0_0, %c0_1, %c0_2] : memref<1x4x256xf32, #tpu.memory_space<vmem>>, vector<1x4x256xf32>
    %4 = vector.broadcast %0 : f32 to vector<1x4x256xf32>
    %5 = arith.mulf %3, %4 : vector<1x4x256xf32>
    %c0_3 = arith.constant 0 : index
    %c0_4 = arith.constant 0 : index
    %c0_5 = arith.constant 0 : index
    %6 = vector.load %arg5[%c0_3, %c0_4, %c0_5] : memref<1x4x256xf32, #tpu.memory_space<vmem>>, vector<1x4x256xf32>
    %7 = vector.broadcast %1 : f32 to vector<1x4x256xf32>
    %8 = arith.mulf %6, %7 : vector<1x4x256xf32>
    %9 = arith.addf %5, %8 : vector<1x4x256xf32>
    %c0_6 = arith.constant 0 : index
    %c0_7 = arith.constant 0 : index
    %c0_8 = arith.constant 0 : index
    %10 = vector.load %arg6[%c0_6, %c0_7, %c0_8] : memref<1x4x256xf32, #tpu.memory_space<vmem>>, vector<1x4x256xf32>
    %11 = vector.broadcast %2 : f32 to vector<1x4x256xf32>
    %12 = arith.mulf %10, %11 : vector<1x4x256xf32>
    %13 = arith.addf %9, %12 : vector<1x4x256xf32>
    %c0_9 = arith.constant 0 : index
    %c0_10 = arith.constant 0 : index
    %c0_11 = arith.constant 0 : index
    %14 = vector.load %arg7[%c0_9, %c0_10, %c0_11] : memref<1x4x256xf32, #tpu.memory_space<vmem>>, vector<1x4x256xf32>
    tpu.vector_store %arg7[%c0_9, %c0_10, %c0_11], %13 {strides = array<i32>} : memref<1x4x256xf32, #tpu.memory_space<vmem>>, vector<1x4x256xf32>,
    return
  }
  func.func @transform_0(%arg0: i32, %arg1: i32, %arg2: i32) -> i32 {
    %c0_i32 = arith.constant 0 : i32
    %c0_i32_0 = arith.constant 0 : i32
    return %c0_i32 : i32
  }
  func.func @transform_1(%arg0: i32, %arg1: i32, %arg2: i32) -> (i32, i32, i32) {
    %c0_i32 = arith.constant 0 : i32
    return %arg0, %arg2, %arg1 : i32, i32, i32
  }
  func.func @transform_2(%arg0: i32, %arg1: i32, %arg2: i32) -> (i32, i32, i32) {
    %c0_i32 = arith.constant 0 : i32
    return %arg0, %arg2, %arg1 : i32, i32, i32
  }
  func.func @transform_3(%arg0: i32, %arg1: i32, %arg2: i32) -> (i32, i32, i32) {
    %c0_i32 = arith.constant 0 : i32
    return %arg0, %arg2, %arg1 : i32, i32, i32
  }
  func.func @transform_4(%arg0: i32, %arg1: i32, %arg2: i32) -> (i32, i32, i32) {
    %c0_i32 = arith.constant 0 : i32
    return %arg0, %arg2, %arg1 : i32, i32, i32
  }
}

</mosaic_0001>

<bundles_post_ra>
// kernel: tpu_custom_call.1
= control target key start
LH: loop header
LB: loop body
LE: loop exit
PB: predicated region body
PF: predicated region fallthrough
CT: control target
= control target key end

     0   :  { %9 = vsyncpa [#allocation5], 0  ;;  %s978_s0 = inlined_call_operand.vmem [shape: f32[3], index: 0, kind: input, shape index: {}]   ;;  %s979_s1 = inlined_call_operand.hbm [shape: f32[2,4,256], index: 1, kind: input, shape index: {}, may-alias: {1,4}]   ;;  %s980_s2 = inlined_call_operand.vmem [shape: f32[2,4,256], index: 2, kind: input, shape index: {}]   ;;  %s981_s3 = inlined_call_operand.vmem [shape: f32[2,4,256], index: 3, kind: input, shape index: {}]   ;;  %s982_s4 = inlined_call_operand.hbm [shape: f32[2,4,256], index: 4, kind: output, shape index: {}, may-alias: {1,4}]  }
   0x1   :  { %10 = vsyncpa [#allocation3], 0 }
   0x2   :  { %12 = vsyncpa [#allocation3 + $0x1], 0 }
   0x3   :  { %13 = vsyncpa [#allocation4], 0 }
   0x4   :  { %15 = vsyncpa [#allocation4 + $0x1], 0  ;;  %s803_s15 = smov 0   ;;  %s805_s16 = smov 0  }
   0x5   :  { %s807_s17 = smov 0   ;;  %s809_s18 = smov 0  }
   0x6   :  { %s811_s19 = smov 0   ;;  %s813_s20 = smov 0  }
   0x7 LB: > { %s546_s21 = sadd.s32 4294967295, %s773_s20   ;;  %s547_s22 = sadd.s32 4294967294, %s773_s20   ;;  %s773_s20 = sphi %s813_s20, %s21_s20   ;;  %s769_s19 = sphi %s811_s19, %s999_s19   ;;  %s765_s18 = sphi %s809_s18, %s998_s18   ;;  %s761_s17 = sphi %s807_s17, %s997_s17   ;;  %s757_s16 = sphi %s805_s16, %s996_s16   ;;  %s753_s15 = sphi %s803_s15, %s995_s15  }
   0x8   : > { %p85_p0 = scmp.ne.s32.totalorder %s757_s16, %s753_s15  ;;  %p837_p1 = scmp.eq.s32.totalorder %s546_s21, 0 }
   0x9   : > { %p841_p2 = scmp.eq.s32.totalorder %s546_s21, 1  ;;  %p179_p3 = scmp.eq.s32.totalorder %s547_s22, 1 }
   0xa   : > { %p847_p4 = por %p837_p1, %p85_p0  ;;  %p548_p5 = scmp.ge.s32.totalorder %s773_s20, 1 }
   0xb   : > { %p852_p6 = por %p179_p3, %p85_p0  ;;  %p186_p7 = scmp.lt.s32.totalorder %s773_s20, 3 }
   0xc   : > { %s986_s25 = scalar_select %p847_p4, 1, 0 }
   0xd   : > { %s987_s26 = scalar_select %p852_p6, 1, 0 }
   0xe   : > { %s199_s29 = sshll.u32 %s978_s0, 4  ;;  %p860_p8 = pnand %p548_p5, %p186_p7  ;;  %s200_s29 = int_to_ptr.vmem [resolvable:$true] %s199_s29 }
   0xf   : > { %s40_s6 = sadd.s32 1, %s769_s19  ;;  %s72_s7 = sadd.s32 1, %s761_s17 }
  0x10   : > { %p581_p10 = pneg %p860_p8  ;;  %p42_p12 = scmp.ge.s32.totalorder %s40_s6, 2 }
  0x11   : > { %s646_s8 = scalar_lea.vmem %s200_s29, 16  ;;  %p654_p7 = scmp.lt.s32.totalorder %s200_s29, %s200_s29 }
  0x12   : > { %p869_p11 = pnand %p581_p10, %p837_p1  ;;  %p647_p13 = scmp.ne.s32.totalorder %s200_s29, %s646_s8 }
  0x13   : > { %p655_p6 = scmp.lt.s32.totalorder %s646_s8, %s646_s8 }
  0x14   : > { %p648_p0 = pneg %p869_p11 }
  0x15   : > { %p656_p9 = por %p655_p6, %p654_p7 }
  0x16   : > { %p649_p3 = pnand %p648_p0, %p647_p13 }
  0x18   : > { %p650_p5 = pneg %p649_p3 }
  0x1a   : > { %p657_p4 = pnand %p656_p9, %p650_p5 }
  0x1c   : > { %660 = shalt.err (!%p657_p4)
}
  0x1d   : > { %s775_s9 = smov [#allocation2]   ;;  %s1001_s6 = smov (%p42_p12, %s40_s6), 0 }
  0x1e   : > { %584 = dma.vmem_to_smem (!%p869_p11), %s200_s29, 16, %s775_s9, [#allocation5]  }
  0x1f   : > { %p79_p10 = scmp.ne.s32.totalorder %s761_s17, %s757_s16  ;;  %p80_p6 = scmp.eq.s32.totalorder %s773_s20, 0 }
  0x20   : > { %s65_s10 = ssub.s32 %s769_s19, %s1001_s6  ;;  %p594_p4 = scmp.lt.s32.totalorder %s773_s20, 2 }
  0x21   : > { %p70_p9 = scmp.eq.s32.totalorder %s65_s10, 0  ;;  %p81_p13 = por %p80_p6, %p79_p10 }
  0x22   : > { %p889_p0 = por %p841_p2, %p79_p10  ;;  %s210_s12 = sand.u32 1, %s761_s17  }
  0x23   : > { %s895_s13 = scalar_select %p70_p9, %s761_s17, %s72_s7  }
  0x24   : > { %s551_s14 = sshll.u32 %s210_s12, 3  ;;  %s569_s21 = sshll.u32 %s769_s19, 7 }
  0x25   : > { %s224_s28 = scalar_lea.hbm %s979_s1, %s569_s21  ;;  %s214_s29 = scalar_lea.vmem [#allocation6], %s551_s14 }
  0x26   : > { %s226_s5 = sshll.u32 %s214_s29, 4  ;;  %p901_p11 = pnand %p594_p4, %p81_p13  ;;  %s227_s5 = int_to_ptr.vmem [resolvable:$true] %s226_s5 }
  0x27   : > { %s211_s24 = scalar_lea.sflag [#allocation3], %s210_s12  ;;  %s674_s9 = scalar_lea.vmem %s227_s5, 128 }
  0x28   : > { %p663_p2 = pneg %p901_p11  ;;  %p675_p12 = scmp.ne.s32.totalorder %s227_s5, %s674_s9 }
  0x29   : > { %s776_s7 = smov [#allocation6]  }
  0x2a   : > { %p677_p3 = pnand %p675_p12, %p663_p2  ;;  %s679_s10 = sshll.u32 %s776_s7, 4  ;;  %s680_s10 = int_to_ptr.vmem [resolvable:$false] %s679_s10 }
  0x2b   : > { %s681_s22 = scalar_lea.vmem %s680_s10, 256  ;;  %p682_p7 = scmp.lt.s32.totalorder %s227_s5, %s680_s10 }
  0x2c   : > { %p678_p5 = pneg %p677_p3  ;;  %p683_p10 = scmp.lt.s32.totalorder %s681_s22, %s674_s9 }
  0x2e   : > { %p684_p6 = por %p683_p10, %p682_p7 }
  0x30   : > { %p685_p9 = pnand %p684_p6, %p678_p5 }
  0x32   : > { %688 = shalt.err (!%p685_p9)
}
  0x33   : > { %588 = dma.hbm_to_vmem [thread:$0]  (!%p901_p11), %s224_s28, 128, %s227_s5, %s211_s24  }
  0x34   : > { %269 = sbr.rel (%p860_p8) target bundleno = 92 (0x5c), region = 36 }
  0x39   : > { %740 = dma.done.wait (%p837_p1), [#allocation5], 16  }
  0x3a   : > { %742 = vsyncadd (%p837_p1), [#allocation5], 4294967280  ;;  %s916_s12 = sand.u32 1, %s757_s16   ;;  %p992_p4 = scmp.ne.s32.totalorder %s986_s25, 0 }
  0x3b   : > { %s556_s14 = sshll.u32 %s916_s12, 3  ;;  %s276_s21 = scalar_lea.sflag [#allocation3], %s916_s12 }
  0x3c   : > { %s279_s27 = scalar_lea.vmem [#allocation6], %s556_s14 }
  0x3d   : > { %744 = dma.done.wait (%p992_p4), %s276_s21, 128  }
  0x3e   : > { %746 = vsyncadd (%p992_p4), %s276_s21, 4294967168 }
  0x3f   : > { %284 = sfence }
  0x40   : > { %p333_p8 = scmp.lt.s32.totalorder %s765_s18, 1  ;;  %s361_s23 = sld [smem:[#allocation2]]  ;;  %v364_v0 = vld [vmem:[%s279_s27] sm:$0xff] }
  0x41   : > { %s562_s28 = sld [smem:[#allocation2 + $0x1]]  ;;  %s330_s25 = scalar_lea.vmem [#allocation7], %s556_s14 }
  0x42   : > { %s334_s30 = scalar_select %p333_p8, %s765_s18, 1 }
  0x43   : > { %s563_s5 = sld [smem:[#allocation2 + $0x2]]  ;;  %s395_s21 = sshll.u32 %s330_s25, 4  ;;  %s933_s21 = int_to_ptr.vmem [resolvable:$true] %s395_s21 }
  0x44   : > { %s570_s29 = sshll.u32 %s334_s30, 3  ;;  %s572_s30 = sshll.u32 %s765_s18, 7 }
  0x45   : > { %s344_s9 = scalar_lea.vmem %s980_s2, %s570_s29  ;;  %s358_s22 = scalar_lea.vmem %s981_s3, %s570_s29 }
  0x46   : > { %v365_v1 = vstv %s361_s23  ;;  %v367_v2 = vld [vmem:[%s344_s9] sm:$0xff]  ;;  %s393_s29 = scalar_lea.hbm %s982_s4, %s572_s30  ;;  %s377_s8 = scalar_lea.sflag [#allocation4], %s916_s12 }
  0x47   : > { %v366_v3 = vmul.f32 %v365_v1, %v364_v0  ;;  %v371_v4 = vld [vmem:[%s358_s22] sm:$0xff]  ;;  %v368_v5 = vstv %s562_s28  ;;  %s689_s28 = scalar_lea.vmem %s933_s21, 128  ;;  %s777_s14 = smov [#allocation7]  }
  0x48   : > { %v369_v6 = vmul.f32 %v368_v5, %v367_v2  ;;  %p690_p1 = scmp.ne.s32.totalorder %s933_s21, %s689_s28  ;;  %s693_s18 = sshll.u32 %s777_s14, 4  ;;  %s694_s18 = int_to_ptr.vmem [resolvable:$false] %s693_s18 }
  0x49   : > { %v372_v7 = vstv %s563_s5  ;;  %s695_s5 = scalar_lea.vmem %s694_s18, 256  ;;  %p696_p2 = scmp.lt.s32.totalorder %s933_s21, %s694_s18 }
  0x4a   : > { %v373_v8 = vmul.f32 %v372_v7, %v371_v4  ;;  %v370_v9 = vadd.f32 %v369_v6, %v366_v3  ;;  %p691_p13 = pnand %p690_p1, %p889_p0  ;;  %p697_p12 = scmp.lt.s32.totalorder %s695_s5, %s689_s28 }
  0x4c   : > { %v374_v10 = vadd.f32 %v373_v8, %v370_v9  ;;  %p692_p11 = pneg %p691_p13  ;;  %p698_p3 = por %p697_p12, %p696_p2 }
  0x4e   : > { %375 = vst [vmem:[%s330_s25] sm:$0xff] %v374_v10  ;;  %p699_p5 = pnand %p698_p3, %p692_p11 }
  0x50   : > { %702 = shalt.err (!%p699_p5)
}
  0x51   : > { %s703_s24 = scalar_lea.hbm %s393_s29, 128  ;;  %s707_s7 = scalar_lea.hbm %s982_s4, 256 }
  0x52   : > { %p704_p7 = scmp.ne.s32.totalorder %s393_s29, %s703_s24  ;;  %p708_p9 = scmp.lt.s32.totalorder %s393_s29, %s982_s4 }
  0x53   : > { %p709_p4 = scmp.lt.s32.totalorder %s707_s7, %s703_s24 }
  0x54   : > { %p705_p10 = pnand %p704_p7, %p889_p0 }
  0x55   : > { %p710_p8 = por %p709_p4, %p708_p9 }
  0x56   : > { %p706_p6 = pneg %p705_p10 }
  0x58   : > { %p711_p1 = pnand %p710_p8, %p706_p6 }
  0x5a   : > { %714 = shalt.err (!%p711_p1)
}
  0x5b   : > { %579 = dma.vmem_to_hbm [thread:$0]  (%p889_p0), %s933_s21, 128, %s393_s29, %s377_s8  }
  0x5c PF: > { %s407_s25 = sand.u32 1, %s753_s15   ;;  %p993_p13 = scmp.ne.s32.totalorder %s987_s26, 0 }
  0x5d   : > { %p994_p11 = scmp.ge.s32.totalorder %s773_s20, 2  ;;  %s408_s30 = scalar_lea.sflag [#allocation4], %s407_s25 }
  0x5f   : > { %p590_p2 = pnand %p994_p11, %p993_p13 }
  0x61   : > { %p591_p12 = pneg %p590_p2 }
  0x63   : > { %748 = dma.done.wait (%p591_p12), %s408_s30, 128  }
  0x64   : > { %750 = vsyncadd (%p591_p12), %s408_s30, 4294967168  ;;  %s21_s20 = sadd.s32 1, %s773_s20   ;;  %s995_s15 = smov %s757_s16 }
  0x65   : > { %p18_p3 = scmp.ge.s32.totalorder %s21_s20, 4   ;;  %s996_s16 = smov %s761_s17 }
  0x66   : > { %s997_s17 = smov %s895_s13  ;;  %s998_s18 = smov %s769_s19 }
  0x67   : > { %s999_s19 = smov %s1001_s6  ;;  %20 = sbr.rel (!%p18_p3) target bundleno = 7 (0x7), region = 92 }
  0x6c   :  { %413 = vsyncpa [#allocation3], 1 }
  0x6d   :  { %415 = vsyncpa [#allocation3 + $0x1], 1 }
  0x6e   :  { %416 = vsyncpa [#allocation4], 1 }
  0x6f   :  { %418 = vsyncpa [#allocation4 + $0x1], 1 }
  0x70   :  { %419 = vsyncpa [#allocation5], 1 }
  0x71   :  { %421 = vsyncpa [#allocation5 + $0x1], 1 }

</bundles_post_ra>
